<compile_context>
chip_gen: v6e
topology: v6e:2x2x1
jax: 0.10.0
libtpu: 0.0.40
codegen_flags: <defaults>
</compile_context>

<pallas_src>
import functools

import jax
import jax.numpy as jnp
import numpy as np
from jax import lax
from jax.experimental import pallas as pl
from jax.experimental.pallas import tpu as pltpu

_LANE = 128
_MAX_BLOCK_ROWS = 64   # 64 rows * 128 lanes = 8192 boxes per grid step
                       # (~288 KiB inputs/step, ~0.6 MiB double-buffered:
                       #  safe on v5e/v6e/v7x VMEM and default scoped limit)


def _diou_kernel(n_ref, *refs, eps, block_rows, has_weight, elementwise):
    # n_ref:            (1,) int32 scalar-prefetch = number of valid boxes
    # pred_ref/tgt_ref: (4, block_rows, 128) coordinate-major box tiles
    # w_ref (optional): (block_rows, 128) per-box weights
    # out_ref:          (8, 128) per-block partial sums      (mean/sum path)
    #                   (block_rows, 128) weighted loss tile ('none' path)
    if has_weight:
        pred_ref, tgt_ref, w_ref, out_ref = refs
    else:
        pred_ref, tgt_ref, out_ref = refs
        w_ref = None

    p_x1 = pred_ref[0]
    p_y1 = pred_ref[1]
    p_x2 = pred_ref[2]
    p_y2 = pred_ref[3]
    t_x1 = tgt_ref[0]
    t_y1 = tgt_ref[1]
    t_x2 = tgt_ref[2]
    t_y2 = tgt_ref[3]

    # intersection
    iw = jnp.maximum(jnp.minimum(p_x2, t_x2) - jnp.maximum(p_x1, t_x1), 0.0)
    ih = jnp.maximum(jnp.minimum(p_y2, t_y2) - jnp.maximum(p_y1, t_y1), 0.0)
    overlap = iw * ih

    # union / IoU
    ap = (p_x2 - p_x1) * (p_y2 - p_y1)
    ag = (t_x2 - t_x1) * (t_y2 - t_y1)
    ious = overlap / (ap + ag - overlap + eps)

    # enclosing box diagonal
    enc_w = jnp.maximum(jnp.maximum(p_x2, t_x2) - jnp.minimum(p_x1, t_x1), 0.0)
    enc_h = jnp.maximum(jnp.maximum(p_y2, t_y2) - jnp.minimum(p_y1, t_y1), 0.0)
    c2 = enc_w * enc_w + enc_h * enc_h + eps

    # squared center distance
    dx = (t_x1 + t_x2) - (p_x1 + p_x2)
    dy = (t_y1 + t_y2) - (p_y1 + p_y2)
    rho2 = (dx * dx + dy * dy) * 0.25

    loss = 1.0 - (ious - rho2 / c2)                   # (block_rows, 128)

    # Padding mask generated on the VPU from the scalar-prefetched box count.
    row = lax.broadcasted_iota(jnp.int32, (block_rows, _LANE), 0)
    lane = lax.broadcasted_iota(jnp.int32, (block_rows, _LANE), 1)
    gidx = (pl.program_id(0) * block_rows + row) * _LANE + lane
    mask = (gidx < n_ref[0]).astype(jnp.float32)

    w = mask if w_ref is None else mask * w_ref[...]
    weighted = loss * w

    if elementwise:
        out_ref[...] = weighted
    else:
        # Fold sublane groups with plain VALU adds; the cheap cross-lane /
        # cross-block finish is done in XLA on the (grid*8, 128) partials.
        partial = weighted[0:8, :]
        for r in range(8, block_rows, 8):
            partial = partial + weighted[r:r + 8, :]
        out_ref[...] = partial


def diou_loss_forward(pred, target, weight=None, avg_factor=None,
                      reduction_override=None, *, eps=1e-6,
                      reduction='mean', loss_weight=1.0, block_rows=None):
    """Mirrors DIoULoss.forward (defaults eps=1e-6, reduction='mean')."""
    assert reduction_override in (None, 'none', 'mean', 'sum')
    reduction = reduction_override if reduction_override else reduction

    pred = jnp.asarray(pred, jnp.float32)
    target = jnp.asarray(target, jnp.float32)
    n = pred.shape[0]

    w_raw = None
    w_vec = None
    if weight is not None:
        w_raw = jnp.asarray(weight, jnp.float32)
        if w_raw.ndim > 1:
            assert w_raw.shape == pred.shape
            w_vec = w_raw.mean(-1)
        else:
            w_vec = w_raw

    # ---- tile sizing: dense (block_rows, 128) tiles of boxes ---------------
    rows_needed = max(1, (n + _LANE - 1) // _LANE)
    if block_rows is None:
        block_rows = min(_MAX_BLOCK_ROWS, ((rows_needed + 7) // 8) * 8)
    assert block_rows % 8 == 0
    rows_pad = ((rows_needed + block_rows - 1) // block_rows) * block_rows
    n_pad = rows_pad * _LANE
    grid = (rows_pad // block_rows,)

    # Coordinate-major layout (4, rows_pad, 128); single transpose + pad.
    pred_cm = jnp.pad(pred.T, ((0, 0), (0, n_pad - n))).reshape(4, rows_pad, _LANE)
    tgt_cm = jnp.pad(target.T, ((0, 0), (0, n_pad - n))).reshape(4, rows_pad, _LANE)

    inputs = [pred_cm, tgt_cm]
    in_specs = [
        pl.BlockSpec((4, block_rows, _LANE), lambda i, n_s: (0, i, 0)),
        pl.BlockSpec((4, block_rows, _LANE), lambda i, n_s: (0, i, 0)),
    ]
    has_weight = w_vec is not None
    if has_weight:
        w_cm = jnp.pad(w_vec, (0, n_pad - n)).reshape(rows_pad, _LANE)
        inputs.append(w_cm)
        in_specs.append(pl.BlockSpec((block_rows, _LANE), lambda i, n_s: (i, 0)))

    elementwise = (reduction == 'none')
    if elementwise:
        out_shape = jax.ShapeDtypeStruct((rows_pad, _LANE), jnp.float32)
        out_specs = pl.BlockSpec((block_rows, _LANE), lambda i, n_s: (i, 0))
    else:
        out_shape = jax.ShapeDtypeStruct((grid[0] * 8, _LANE), jnp.float32)
        out_specs = pl.BlockSpec((8, _LANE), lambda i, n_s: (i, 0))

    kernel = functools.partial(_diou_kernel, eps=eps, block_rows=block_rows,
                               has_weight=has_weight, elementwise=elementwise)

    n_scalar = jnp.array([n], dtype=jnp.int32)
    out = pl.pallas_call(
        kernel,
        out_shape=out_shape,
        grid_spec=pltpu.PrefetchScalarGridSpec(
            num_scalar_prefetch=1,
            grid=grid,
            in_specs=in_specs,
            out_specs=out_specs,
        ),
        compiler_params=pltpu.CompilerParams(
            dimension_semantics=("parallel",)),
    )(n_scalar, *inputs)

    if elementwise:
        per_box = out.reshape(-1)[:n]
        # TODO(synk): torch's all-weights-nonpositive early-exit returns a
        # scalar (pred*weight).sum(); that shape-changing branch is not
        # replicated for reduction='none'.
        return loss_weight * per_box

    total = out.sum()
    if reduction == 'mean':
        reduced = total / (n if avg_factor is None else avg_factor)
    else:  # 'sum'
        if avg_factor is not None:
            raise ValueError('avg_factor can not be used with reduction="sum"')
        reduced = total

    result = loss_weight * reduced

    if w_raw is not None:
        # jit-safe replacement for `if not torch.any(weight > 0): return
        # (pred * weight).sum()` (note: torch does NOT scale this by
        # loss_weight).
        w_b = w_raw if w_raw.ndim > 1 else w_raw[:, None]
        early = (pred * w_b).sum()
        result = jnp.where(jnp.any(w_raw > 0), result, early)

    return result


# ----------------------------- reference (pure JAX) -------------------------
def _diou_reference(pred, target, weight=None, avg_factor=None,
                    eps=1e-6, reduction='mean', loss_weight=1.0):
    lt = jnp.maximum(pred[:, :2], target[:, :2])
    rb = jnp.minimum(pred[:, 2:], target[:, 2:])
    wh = jnp.maximum(rb - lt, 0.0)
    overlap = wh[:, 0] * wh[:, 1]
    ap = (pred[:, 2] - pred[:, 0]) * (pred[:, 3] - pred[:, 1])
    ag = (target[:, 2] - target[:, 0]) * (target[:, 3] - target[:, 1])
    union = ap + ag - overlap + eps
    ious = overlap / union
    enc_wh = jnp.maximum(jnp.maximum(pred[:, 2:], target[:, 2:]) -
                         jnp.minimum(pred[:, :2], target[:, :2]), 0.0)
    c2 = enc_wh[:, 0] ** 2 + enc_wh[:, 1] ** 2 + eps
    left = (target[:, 0] + target[:, 2] - (pred[:, 0] + pred[:, 2])) ** 2 / 4
    right = (target[:, 1] + target[:, 3] - (pred[:, 1] + pred[:, 3])) ** 2 / 4
    loss = 1 - (ious - (left + right) / c2)
    if weight is not None:
        loss = loss * weight
    if avg_factor is None:
        if reduction == 'mean':
            loss = loss.mean()
        elif reduction == 'sum':
            loss = loss.sum()
    elif reduction == 'mean':
        loss = loss.sum() / avg_factor
    return loss_weight * loss


def _make_boxes(key, n):
    k1, k2, k3 = jax.random.split(key, 3)
    xy = jax.random.uniform(k1, (n, 2), jnp.float32, 0.0, 10.0)
    wh = jax.random.uniform(k2, (n, 2), jnp.float32, 0.5, 5.0)
    pred = jnp.concatenate([xy, xy + wh], axis=-1)
    xy_t = xy + jax.random.uniform(k3, (n, 2), jnp.float32, -1.0, 1.0)
    target = jnp.concatenate([xy_t, xy_t + wh * 1.1], axis=-1)
    return pred, target


if __name__ == "__main__":
    key = jax.random.PRNGKey(0)
    kb, kb2, kw2 = jax.random.split(key, 3)

    # --- small case: n=8 boxes -----------------------------------------------
    n = 8
    pred, target = _make_boxes(kb, n)
    weight = jnp.ones((n,), jnp.float32).at[0].set(2.0)

    # mean, with per-box weight
    out = jax.block_until_ready(diou_loss_forward(pred, target, weight=weight))
    ref = _diou_reference(pred, target, weight=weight)
    np.testing.assert_allclose(np.asarray(out), np.asarray(ref),
                               rtol=1e-5, atol=1e-5)

    # sum, no weight
    out = jax.block_until_ready(
        diou_loss_forward(pred, target, reduction_override='sum'))
    ref = _diou_reference(pred, target, reduction='sum')
    np.testing.assert_allclose(np.asarray(out), np.asarray(ref),
                               rtol=1e-5, atol=1e-5)

    # none, with weight (per-box losses)
    out = jax.block_until_ready(
        diou_loss_forward(pred, target, weight=weight,
                          reduction_override='none'))
    ref = _diou_reference(pred, target, weight=weight, reduction='none')
    np.testing.assert_allclose(np.asarray(out), np.asarray(ref),
                               rtol=1e-5, atol=1e-5)

    # --- larger case exercising a multi-block grid + in-kernel padding mask --
    n2 = 2000
    pred2, target2 = _make_boxes(kb2, n2)
    weight2 = jax.random.uniform(kw2, (n2,), jnp.float32, 0.0, 2.0)
    out = jax.block_until_ready(
        diou_loss_forward(pred2, target2, weight=weight2,
                          avg_factor=123.0, block_rows=8))
    ref = _diou_reference(pred2, target2, weight=weight2, avg_factor=123.0)
    np.testing.assert_allclose(np.asarray(out), np.asarray(ref),
                               rtol=1e-4, atol=1e-4)

    print("KERNEL_OK")
</pallas_src>

<mosaic_0001>
module attributes {stable_mosaic.version = 11 : i64} {
  func.func @_diou_kernel(%arg0: i32, %arg1: memref<1xi32, #tpu.memory_space<smem>>, %arg2: memref<4x8x128xf32, #tpu.memory_space<vmem>>, %arg3: memref<4x8x128xf32, #tpu.memory_space<vmem>>, %arg4: memref<8x128xf32, #tpu.memory_space<vmem>>, %arg5: memref<8x128xf32, #tpu.memory_space<vmem>>) attributes {dimension_semantics = [#tpu.dimension_semantics<parallel>], iteration_bounds = array<i64: 1>, scalar_prefetch = 1 : i64, scratch_operands = 0 : i64, tpu.core_type = #tpu.core_type<tc>, window_params = [{transform_indices = @transform_0, window_bounds = array<i64: 4, 8, 128>}, {transform_indices = @transform_1, window_bounds = array<i64: 4, 8, 128>}, {transform_indices = @transform_2, window_bounds = array<i64: 8, 128>}, {transform_indices = @transform_3, window_bounds = array<i64: 8, 128>}]} {
    %c0 = arith.constant 0 : index
    %c0_0 = arith.constant 0 : index
    %c0_1 = arith.constant 0 : index
    %0 = vector.load %arg2[%c0, %c0_0, %c0_1] : memref<4x8x128xf32, #tpu.memory_space<vmem>>, vector<1x8x128xf32>
    %1 = vector.shape_cast %0 : vector<1x8x128xf32> to vector<8x128xf32>
    %c1 = arith.constant 1 : index
    %c0_2 = arith.constant 0 : index
    %c0_3 = arith.constant 0 : index
    %2 = vector.load %arg2[%c1, %c0_2, %c0_3] : memref<4x8x128xf32, #tpu.memory_space<vmem>>, vector<1x8x128xf32>
    %3 = vector.shape_cast %2 : vector<1x8x128xf32> to vector<8x128xf32>
    %c2 = arith.constant 2 : index
    %c0_4 = arith.constant 0 : index
    %c0_5 = arith.constant 0 : index
    %4 = vector.load %arg2[%c2, %c0_4, %c0_5] : memref<4x8x128xf32, #tpu.memory_space<vmem>>, vector<1x8x128xf32>
    %5 = vector.shape_cast %4 : vector<1x8x128xf32> to vector<8x128xf32>
    %c3 = arith.constant 3 : index
    %c0_6 = arith.constant 0 : index
    %c0_7 = arith.constant 0 : index
    %6 = vector.load %arg2[%c3, %c0_6, %c0_7] : memref<4x8x128xf32, #tpu.memory_space<vmem>>, vector<1x8x128xf32>
    %7 = vector.shape_cast %6 : vector<1x8x128xf32> to vector<8x128xf32>
    %c0_8 = arith.constant 0 : index
    %c0_9 = arith.constant 0 : index
    %c0_10 = arith.constant 0 : index
    %8 = vector.load %arg3[%c0_8, %c0_9, %c0_10] : memref<4x8x128xf32, #tpu.memory_space<vmem>>, vector<1x8x128xf32>
    %9 = vector.shape_cast %8 : vector<1x8x128xf32> to vector<8x128xf32>
    %c1_11 = arith.constant 1 : index
    %c0_12 = arith.constant 0 : index
    %c0_13 = arith.constant 0 : index
    %10 = vector.load %arg3[%c1_11, %c0_12, %c0_13] : memref<4x8x128xf32, #tpu.memory_space<vmem>>, vector<1x8x128xf32>
    %11 = vector.shape_cast %10 : vector<1x8x128xf32> to vector<8x128xf32>
    %c2_14 = arith.constant 2 : index
    %c0_15 = arith.constant 0 : index
    %c0_16 = arith.constant 0 : index
    %12 = vector.load %arg3[%c2_14, %c0_15, %c0_16] : memref<4x8x128xf32, #tpu.memory_space<vmem>>, vector<1x8x128xf32>
    %13 = vector.shape_cast %12 : vector<1x8x128xf32> to vector<8x128xf32>
    %c3_17 = arith.constant 3 : index
    %c0_18 = arith.constant 0 : index
    %c0_19 = arith.constant 0 : index
    %14 = vector.load %arg3[%c3_17, %c0_18, %c0_19] : memref<4x8x128xf32, #tpu.memory_space<vmem>>, vector<1x8x128xf32>
    %15 = vector.shape_cast %14 : vector<1x8x128xf32> to vector<8x128xf32>
    %16 = arith.minimumf %5, %13 : vector<8x128xf32>
    %17 = arith.maximumf %1, %9 : vector<8x128xf32>
    %18 = arith.subf %16, %17 : vector<8x128xf32>
    %cst = arith.constant 0.000000e+00 : f32
    %19 = vector.broadcast %cst : f32 to vector<8x128xf32>
    %20 = arith.maximumf %18, %19 : vector<8x128xf32>
    %21 = arith.minimumf %7, %15 : vector<8x128xf32>
    %22 = arith.maximumf %3, %11 : vector<8x128xf32>
    %23 = arith.subf %21, %22 : vector<8x128xf32>
    %cst_20 = arith.constant 0.000000e+00 : f32
    %24 = vector.broadcast %cst_20 : f32 to vector<8x128xf32>
    %25 = arith.maximumf %23, %24 : vector<8x128xf32>
    %26 = arith.mulf %20, %25 : vector<8x128xf32>
    %27 = arith.subf %5, %1 : vector<8x128xf32>
    %28 = arith.subf %7, %3 : vector<8x128xf32>
    %29 = arith.mulf %27, %28 : vector<8x128xf32>
    %30 = arith.subf %13, %9 : vector<8x128xf32>
    %31 = arith.subf %15, %11 : vector<8x128xf32>
    %32 = arith.mulf %30, %31 : vector<8x128xf32>
    %33 = arith.addf %29, %32 : vector<8x128xf32>
    %34 = arith.subf %33, %26 : vector<8x128xf32>
    %cst_21 = arith.constant 9.99999997E-7 : f32
    %35 = vector.broadcast %cst_21 : f32 to vector<8x128xf32>
    %36 = arith.addf %34, %35 : vector<8x128xf32>
    %37 = arith.divf %26, %36 : vector<8x128xf32>
    %38 = arith.maximumf %5, %13 : vector<8x128xf32>
    %39 = arith.minimumf %1, %9 : vector<8x128xf32>
    %40 = arith.subf %38, %39 : vector<8x128xf32>
    %cst_22 = arith.constant 0.000000e+00 : f32
    %41 = vector.broadcast %cst_22 : f32 to vector<8x128xf32>
    %42 = arith.maximumf %40, %41 : vector<8x128xf32>
    %43 = arith.maximumf %7, %15 : vector<8x128xf32>
    %44 = arith.minimumf %3, %11 : vector<8x128xf32>
    %45 = arith.subf %43, %44 : vector<8x128xf32>
    %cst_23 = arith.constant 0.000000e+00 : f32
    %46 = vector.broadcast %cst_23 : f32 to vector<8x128xf32>
    %47 = arith.maximumf %45, %46 : vector<8x128xf32>
    %48 = arith.mulf %42, %42 : vector<8x128xf32>
    %49 = arith.mulf %47, %47 : vector<8x128xf32>
    %50 = arith.addf %48, %49 : vector<8x128xf32>
    %cst_24 = arith.constant 9.99999997E-7 : f32
    %51 = vector.broadcast %cst_24 : f32 to vector<8x128xf32>
    %52 = arith.addf %50, %51 : vector<8x128xf32>
    %53 = arith.addf %9, %13 : vector<8x128xf32>
    %54 = arith.addf %1, %5 : vector<8x128xf32>
    %55 = arith.subf %53, %54 : vector<8x128xf32>
    %56 = arith.addf %11, %15 : vector<8x128xf32>
    %57 = arith.addf %3, %7 : vector<8x128xf32>
    %58 = arith.subf %56, %57 : vector<8x128xf32>
    %59 = arith.mulf %55, %55 : vector<8x128xf32>
    %60 = arith.mulf %58, %58 : vector<8x128xf32>
    %61 = arith.addf %59, %60 : vector<8x128xf32>
    %cst_25 = arith.constant 2.500000e-01 : f32
    %62 = vector.broadcast %cst_25 : f32 to vector<8x128xf32>
    %63 = arith.mulf %61, %62 : vector<8x128xf32>
    %64 = arith.divf %63, %52 : vector<8x128xf32>
    %65 = arith.subf %37, %64 : vector<8x128xf32>
    %cst_26 = arith.constant 1.000000e+00 : f32
    %66 = vector.broadcast %cst_26 : f32 to vector<8x128xf32>
    %67 = arith.subf %66, %65 : vector<8x128xf32>
    %68 = tpu.iota {dimensions = array<i32: 0>} : vector<8x128xi32>
    %69 = tpu.iota {dimensions = array<i32: 1>} : vector<8x128xi32>
    %c8_i32 = arith.constant 8 : i32
    %70 = arith.muli %arg0, %c8_i32 : i32
    %71 = vector.broadcast %70 : i32 to vector<8x128xi32>
    %72 = arith.addi %71, %68 : vector<8x128xi32>
    %c128_i32 = arith.constant 128 : i32
    %73 = vector.broadcast %c128_i32 : i32 to vector<8x128xi32>
    %74 = arith.muli %72, %73 : vector<8x128xi32>
    %75 = arith.addi %74, %69 : vector<8x128xi32>
    %c0_27 = arith.constant 0 : index
    %76 = memref.load %arg1[%c0_27] : memref<1xi32, #tpu.memory_space<smem>>
    %77 = vector.broadcast %76 : i32 to vector<8x128xi32>
    %78 = arith.cmpi slt, %75, %77 : vector<8x128xi32>
    %79 = arith.extui %78 : vector<8x128xi1> to vector<8x128xi32>
    %80 = arith.sitofp %79 : vector<8x128xi32> to vector<8x128xf32>
    %c0_28 = arith.constant 0 : index
    %c0_29 = arith.constant 0 : index
    %81 = vector.load %arg4[%c0_28, %c0_29] : memref<8x128xf32, #tpu.memory_space<vmem>>, vector<8x128xf32>
    %82 = arith.mulf %80, %81 : vector<8x128xf32>
    %83 = arith.mulf %67, %82 : vector<8x128xf32>
    %c0_30 = arith.constant 0 : index
    %c0_31 = arith.constant 0 : index
    %84 = vector.load %arg5[%c0_30, %c0_31] : memref<8x128xf32, #tpu.memory_space<vmem>>, vector<8x128xf32>
    tpu.vector_store %arg5[%c0_30, %c0_31], %83 {strides = array<i32>} : memref<8x128xf32, #tpu.memory_space<vmem>>, vector<8x128xf32>,
    return
  }
  func.func @transform_0(%arg0: i32, %arg1: memref<1xi32, #tpu.memory_space<smem>>) -> (i32, i32, i32) {
    %c0_i32 = arith.constant 0 : i32
    %c0_i32_0 = arith.constant 0 : i32
    %c0_i32_1 = arith.constant 0 : i32
    return %c0_i32, %arg0, %c0_i32_0 : i32, i32, i32
  }
  func.func @transform_1(%arg0: i32, %arg1: memref<1xi32, #tpu.memory_space<smem>>) -> (i32, i32, i32) {
    %c0_i32 = arith.constant 0 : i32
    %c0_i32_0 = arith.constant 0 : i32
    %c0_i32_1 = arith.constant 0 : i32
    return %c0_i32, %arg0, %c0_i32_0 : i32, i32, i32
  }
  func.func @transform_2(%arg0: i32, %arg1: memref<1xi32, #tpu.memory_space<smem>>) -> (i32, i32) {
    %c0_i32 = arith.constant 0 : i32
    %c0_i32_0 = arith.constant 0 : i32
    return %arg0, %c0_i32 : i32, i32
  }
  func.func @transform_3(%arg0: i32, %arg1: memref<1xi32, #tpu.memory_space<smem>>) -> (i32, i32) {
    %c0_i32 = arith.constant 0 : i32
    %c0_i32_0 = arith.constant 0 : i32
    return %arg0, %c0_i32 : i32, i32
  }
}

</mosaic_0001>

<bundles_post_ra>
// kernel: tpu_custom_call.1
= control target key start
LH: loop header
LB: loop body
LE: loop exit
PB: predicated region body
PF: predicated region fallthrough
CT: control target
= control target key end

     0   :  { %10 = vsyncpa [#allocation5], 0  ;;  %s295_s0 = inlined_call_operand.<no memory space> [shape: s32[1], index: 0, kind: input, shape index: {}]   ;;  %s296_s1 = inlined_call_operand.hbm [shape: f32[4,8,128], index: 1, kind: input, shape index: {}]   ;;  %s297_s2 = inlined_call_operand.hbm [shape: f32[4,8,128], index: 2, kind: input, shape index: {}]   ;;  %s298_s3 = inlined_call_operand.hbm [shape: f32[8,128], index: 3, kind: input, shape index: {}]   ;;  %s299_s4 = inlined_call_operand.hbm [shape: f32[8,128], index: 4, kind: output, shape index: {}]  }
   0x1   :  { %11 = vsyncpa [#allocation8], 0 }
   0x2   :  { %12 = vsyncpa [#allocation6], 0  ;;  %s248_s15 = smov [#allocation7]   ;;  %s249_s17 = smov [#allocation4]  }
   0x3   :  { %s30_s16 = sshll.u32 %s248_s15, 4  ;;  %s18_s18 = sshll.u32 %s249_s17, 4  ;;  %s31_s16 = int_to_ptr.vmem [resolvable:$true] %s30_s16  ;;  %s19_s18 = int_to_ptr.vmem [resolvable:$true] %s18_s18 }
   0x4   :  { %s170_s19 = scalar_lea.vmem %s31_s16, 512  ;;  %p175_p1 = scmp.lt.s32.totalorder %s31_s16, %s31_s16 }
   0x5   :  { %p171_p0 = scmp.ne.s32.totalorder %s31_s16, %s170_s19  ;;  %p176_p2 = scmp.lt.s32.totalorder %s170_s19, %s170_s19 }
   0x7   :  { %p177_p3 = por %p176_p2, %p175_p1 }
   0x9   :  { %p178_p4 = pnand %p177_p3, %p171_p0 }
   0xb   :  { %181 = shalt.err (!%p178_p4)
}
   0xc   :  { %s250_s20 = smov 128   ;;  %s251_s21 = smov 8  }
   0xd   :  { %36 = dma.hbm_to_vmem [thread:$0]  %s297_s2, 512, %s31_s16, [#allocation8], %s250_s20, %s250_s20, %s251_s21  }
   0xe   :  { %s190_s24 = scalar_lea.vmem %s19_s18, 512  ;;  %p195_p6 = scmp.lt.s32.totalorder %s19_s18, %s19_s18 }
   0xf   :  { %p191_p5 = scmp.ne.s32.totalorder %s19_s18, %s190_s24  ;;  %p196_p7 = scmp.lt.s32.totalorder %s190_s24, %s190_s24 }
  0x11   :  { %p197_p8 = por %p196_p7, %p195_p6 }
  0x13   :  { %p198_p9 = pnand %p197_p8, %p191_p5 }
  0x15   :  { %201 = shalt.err (!%p198_p9)
}
  0x16   :  { %24 = dma.hbm_to_vmem [thread:$0]  %s296_s1, 512, %s19_s18, [#allocation5], %s250_s20, %s250_s20, %s251_s21  }
  0x17   :  { %s252_s27 = smov [#allocation9]  }
  0x18   :  { %s43_s28 = sshll.u32 %s252_s27, 4  ;;  %s44_s28 = int_to_ptr.vmem [resolvable:$true] %s43_s28 }
  0x19   :  { %s210_s29 = scalar_lea.vmem %s44_s28, 128  ;;  %p215_p11 = scmp.lt.s32.totalorder %s44_s28, %s44_s28 }
  0x1a   :  { %p211_p10 = scmp.ne.s32.totalorder %s44_s28, %s210_s29  ;;  %p216_p12 = scmp.lt.s32.totalorder %s210_s29, %s210_s29 }
  0x1c   :  { %p217_p13 = por %p216_p12, %p215_p11 }
  0x1e   :  { %p218_p0 = pnand %p217_p13, %p211_p10 }
  0x20   :  { %221 = shalt.err (!%p218_p0)
}
  0x21   :  { %46 = dma.hbm_to_vmem [thread:$0]  %s298_s3, 128, %s44_s28, [#allocation8]  }
  0x22   :  { %242 = dma.done.wait [#allocation5], 512  }
  0x23   :  { %243 = vsyncadd [#allocation5], 4294966784 }
  0x24   :  { %244 = dma.done.wait [#allocation8], 640  }
  0x25   :  { %245 = vsyncadd [#allocation8], 4294966656  ;;  %v56_v0 = vld [vmem:[#allocation4] sm:$0xff]  ;;  %v58_v1 = vld [vmem:[#allocation4 + $0x8] sm:$0xff]  ;;  %v116_v34 = vlaneseq  ;;  %v126_v52 = vstv %s295_s0  ;;  %v253_v57 = vmov 0.0   ;;  %s254_s5 = smov [#allocation10]  }
  0x26   :  { %v60_v2 = vld [vmem:[#allocation4 + $0x10] sm:$0xff]  ;;  %v62_v3 = vld [vmem:[#allocation4 + $0x18] sm:$0xff]  ;;  %v63_v4 = vld [vmem:[#allocation7] sm:$0xff]  ;;  %s140_s6 = sshll.u32 %s254_s5, 4  ;;  %s141_s6 = int_to_ptr.vmem [resolvable:$true] %s140_s6 }
  0x27   :  { %v65_v5 = vld [vmem:[#allocation7 + $0x8] sm:$0xff]  ;;  %v79_v6 = vsub.f32 %v60_v2, %v56_v0  ;;  %v67_v7 = vld [vmem:[#allocation7 + $0x10] sm:$0xff]  ;;  %v69_v8 = vld [vmem:[#allocation7 + $0x18] sm:$0xff]  ;;  %v71_v9 = vmax.f32 %v56_v0, %v63_v4  ;;  %v80_v11 = vsub.f32 %v62_v3, %v58_v1  ;;  %v91_v12 = vmin.f32 %v56_v0, %v63_v4  ;;  %s222_s7 = scalar_lea.vmem %s141_s6, 128  ;;  %p227_p2 = scmp.lt.s32.totalorder %s141_s6, %s141_s6 }
  0x28   :  { %v75_v10 = vmax.f32 %v58_v1, %v65_v5  ;;  %v70_v13 = vmin.f32 %v60_v2, %v67_v7  ;;  %v74_v14 = vmin.f32 %v62_v3, %v69_v8  ;;  %v82_v15 = vsub.f32 %v67_v7, %v63_v4  ;;  %v130_v59 = vld [vmem:[#allocation9] sm:$0xff]  ;;  %p223_p1 = scmp.ne.s32.totalorder %s141_s6, %s222_s7  ;;  %p228_p3 = scmp.lt.s32.totalorder %s222_s7, %s222_s7 }
  0x29   :  { %v83_v16 = vsub.f32 %v69_v8, %v65_v5  ;;  %v81_v17 = vmul.f32 %v80_v11, %v79_v6  ;;  %v90_v18 = vmax.f32 %v60_v2, %v67_v7  ;;  %v94_v19 = vmax.f32 %v62_v3, %v69_v8 }
  0x2a   :  { %v95_v20 = vmin.f32 %v58_v1, %v65_v5  ;;  %v72_v21 = vsub.f32 %v70_v13, %v71_v9  ;;  %v76_v22 = vsub.f32 %v74_v14, %v75_v10  ;;  %v102_v32 = vadd.f32 %v67_v7, %v63_v4  ;;  %p229_p4 = por %p228_p3, %p227_p2 }
  0x2b   :  { %v84_v23 = vmul.f32 %v83_v16, %v82_v15  ;;  %v92_v24 = vsub.f32 %v90_v18, %v91_v12  ;;  %v103_v33 = vadd.f32 %v60_v2, %v56_v0  ;;  %v105_v37 = vadd.f32 %v69_v8, %v65_v5 }
  0x2c   :  { %v96_v25 = vsub.f32 %v94_v19, %v95_v20  ;;  %v73_v26 = vmax.f32 %v72_v21, 0.0  ;;  %v77_v27 = vmax.f32 %v76_v22, 0.0  ;;  %v106_v38 = vadd.f32 %v62_v3, %v58_v1  ;;  %p230_p5 = pnand %p229_p4, %p223_p1 }
  0x2d   :  { %v85_v28 = vadd.f32 %v84_v23, %v81_v17  ;;  %v93_v29 = vmax.f32 %v92_v24, 0.0  ;;  %v104_v43 = vsub.f32 %v102_v32, %v103_v33  ;;  %v117_v45 = vshrl.u32 %v116_v34, 7 }
  0x2e   :  { %v97_v30 = vmax.f32 %v96_v25, 0.0  ;;  %v78_v31 = vmul.f32 %v77_v27, %v73_v26  ;;  %v107_v44 = vsub.f32 %v105_v37, %v106_v38  ;;  %v119_v48 = vand.u32 127, %v116_v34 }
  0x2f   :  { %v98_v35 = vmul.f32 %v93_v29, %v93_v29  ;;  %v108_v46 = vmul.f32 %v104_v43, %v104_v43  ;;  %v123_v49 = vmul.u32 128, %v117_v45 }
  0x30   :  { %v99_v36 = vmul.f32 %v97_v30, %v97_v30  ;;  %v86_v39 = vsub.f32 %v85_v28, %v78_v31  ;;  %v109_v47 = vmul.f32 %v107_v44, %v107_v44 }
  0x31   :  { %v124_v51 = vadd.s32 %v123_v49, %v119_v48 }
  0x32   :  { %v100_v40 = vadd.f32 %v99_v36, %v98_v35  ;;  %v87_v41 = vadd.f32 1e-06, %v86_v39  ;;  %v110_v50 = vadd.f32 %v109_v47, %v108_v46 }
  0x33   :  { %vm127_vm0 = vcmp.lt.s32.totalorder %v124_v51, %v126_v52 }
  0x34   :  { %v101_v42 = vadd.f32 1e-06, %v100_v40  ;;  %158 = vrcp.f32 %v87_v41  ;;  %v111_v53 = vmul.f32 0.25, %v110_v50  ;;  %v150_v58 = vsel %vm127_vm0, 1.0, %v253_v57 }
  0x35   :  { %v131_v62 = vmul.f32 %v150_v58, %v130_v59 }
  0x36   :  { %160 = vrcp.f32 %v101_v42 }
  0x41   :  { %v159_v54 = vpop.eup %158 }
  0x42   :  { %v89_v56 = vmul.f32 %v159_v54, %v78_v31 }
  0x43   :  { %v161_v55 = vpop.eup %160 }
  0x44   :  { %v113_v60 = vmul.f32 %v161_v55, %v111_v53 }
  0x46   :  { %v114_v61 = vsub.f32 %v89_v56, %v113_v60 }
  0x48   :  { %v115_v63 = vsub.f32 1.0, %v114_v61 }
  0x4a   :  { %v132_v0 = vmul.f32 %v131_v62, %v115_v63 }
  0x4c   :  { %133 = vst [vmem:[#allocation10] sm:$0xff] %v132_v0 }
  0x4d   :  { %233 = shalt.err (!%p230_p5)
}
  0x4e   :  { %143 = dma.vmem_to_hbm [thread:$0]  %s141_s6, 128, %s299_s4, [#allocation6]  }
  0x4f   :  { %246 = dma.done.wait [#allocation6], 128  }
  0x50   :  { %247 = vsyncadd [#allocation6], 4294967168 }
  0x51   :  { %147 = vsyncpa [#allocation5], 1 }
  0x52   :  { %148 = vsyncpa [#allocation8], 1 }
  0x53   :  { %149 = vsyncpa [#allocation6], 1 }

</bundles_post_ra>
